<compile_context>
chip_gen: v7x
topology: tpu7x:2x2x1
jax: 0.10.0
libtpu: 0.0.40
codegen_flags: <defaults>
</compile_context>

<pallas_src>
import functools

import jax
import jax.numpy as jnp
from jax import lax
from jax.experimental import pallas as pl
from jax.experimental.pallas import tpu as pltpu

_EPS = 1e-5
_SLOPE = 0.2
_MAX_TM = 1024                    # output-row tile (multiple of 8)
_MAX_TK = 512                     # K-reduction tile (multiple of 128)


def _round_up(x, m):
    return (x + m - 1) // m * m


def _pick_tile(total, max_tile, align):
    """Largest t <= max_tile with t % align == 0 and total % t == 0; else `total`."""
    for t in range(min(total, max_tile), align - 1, -1):
        if t % align == 0 and total % t == 0:
            return t
    return total                  # falls back to the full (unsplit) dimension


def _vmem_limit(*byte_counts):
    """Tile footprint + headroom, clamped to [16 MiB, 32 MiB] (v7x-safe)."""
    need = int(sum(byte_counts))
    return int(min(max(need + (8 << 20), 16 << 20), 32 << 20))


# ---------------------------------------------------------------------------
# Pass 1 (normalize path): bf16 conv-as-matmul + fused f32 moment accumulation
# ---------------------------------------------------------------------------
def _conv_moments_kernel(p_ref, w_ref, y_ref, psum_ref, psq_ref, acc_ref, *, tk):
    r = pl.program_id(1)                       # output-row tile index
    k = pl.program_id(2)                       # K-reduction tile index (innermost)

    @pl.when(k == 0)
    def _():
        acc_ref[...] = jnp.zeros_like(acc_ref)

    koff = pl.multiple_of(k * tk, 128)         # slice the resident weight matrix
    acc_ref[...] += jnp.dot(p_ref[0], w_ref[pl.ds(koff, tk), :],
                            preferred_element_type=jnp.float32)

    @pl.when(k == pl.num_programs(2) - 1)
    def _():
        y = acc_ref[...]                       # (tm, Cp) f32
        y_ref[0] = y.astype(y_ref.dtype)       # bf16 un-normalized activations

        @pl.when(r == 0)
        def _():
            psum_ref[...] = jnp.zeros_like(psum_ref)
            psq_ref[...] = jnp.zeros_like(psq_ref)

        psum_ref[0] += jnp.sum(y, axis=0, keepdims=True)      # (1, Cp) f32
        psq_ref[0] += jnp.sum(y * y, axis=0, keepdims=True)   # (1, Cp) f32


# ---------------------------------------------------------------------------
# Pass 2: y * scale + shift (precomputed per image) + LeakyReLU(0.2),
# written transposed to channel-major (NCHW) blocks.
# ---------------------------------------------------------------------------
def _norm_lrelu_kernel(y_ref, scale_ref, shift_ref, out_ref):
    y = y_ref[0].astype(jnp.float32) * scale_ref[0] + shift_ref[0]   # (tm, Cp)
    y = jnp.where(y > 0, y, _SLOPE * y)
    out_ref[0] = y.T[:out_ref.shape[1], :]     # (Cp, tm) -> (C_out, tm)


# ---------------------------------------------------------------------------
# normalize=False path: bf16 conv-as-matmul + bias + LeakyReLU(0.2),
# transposed channel-major output.
# ---------------------------------------------------------------------------
def _conv_bias_kernel(p_ref, w_ref, b_ref, out_ref, acc_ref, *, tk):
    k = pl.program_id(2)

    @pl.when(k == 0)
    def _():
        acc_ref[...] = jnp.zeros_like(acc_ref)

    koff = pl.multiple_of(k * tk, 128)
    acc_ref[...] += jnp.dot(p_ref[0], w_ref[pl.ds(koff, tk), :],
                            preferred_element_type=jnp.float32)

    @pl.when(k == pl.num_programs(2) - 1)
    def _():
        y = acc_ref[...] + b_ref[...]
        y = jnp.where(y > 0, y, _SLOPE * y)
        out_ref[0] = y.T[:out_ref.shape[1], :]


# ---------------------------------------------------------------------------
# Glue: im2col for kernel_size=4, stride=2, padding=1 (XLA-side, bf16)
# ---------------------------------------------------------------------------
def _im2col_k4s2p1(x):
    """x: (N, C, H, W) -> patches (N, Ho*Wo, C*16), K ordered (C, kh, kw)."""
    n, c, h, w = x.shape
    ho, wo = h // 2, w // 2
    xp = jnp.pad(x, ((0, 0), (0, 0), (1, 1), (1, 1)))
    cols = []
    for kh in range(4):
        for kw in range(4):
            cols.append(xp[:, :, kh:kh + 2 * ho:2, kw:kw + 2 * wo:2])   # (N,C,Ho,Wo)
    patches = jnp.stack(cols, axis=2)                                   # (N,C,16,Ho,Wo)
    patches = patches.transpose(0, 3, 4, 1, 2).reshape(n, ho * wo, c * 16)
    return patches, ho, wo


# ---------------------------------------------------------------------------
# Wrapper
# ---------------------------------------------------------------------------
@functools.partial(jax.jit, static_argnames=("normalize", "max_tm", "max_tk"))
def down_block(x, weight, bias=None, *, normalize=True,
               max_tm=_MAX_TM, max_tk=_MAX_TK):
    """DownBlock forward.

    x:      (N, C_in, H, W)  float32 (NCHW)
    weight: (C_out, C_in, 4, 4) float32
    bias:   (C_out,) float32 or None (used only when normalize=False)
    returns (N, C_out, H//2, W//2) float32
    """
    n, c_in, h, w = x.shape
    c_out = weight.shape[0]

    # TODO(synk): build these patches inside the kernel instead of via XLA.
    patches, ho, wo = _im2col_k4s2p1(x.astype(jnp.bfloat16))    # (N, HW, K) bf16
    hw, k = ho * wo, c_in * 16

    kp = _round_up(k, 128)                     # MXU / lane alignment on K
    cp = _round_up(c_out, 128)                 # lane-dense matmul output

    patches = jnp.pad(patches, ((0, 0), (0, 0), (0, kp - k)))
    w_mat = jnp.pad(weight.reshape(c_out, k).T.astype(jnp.bfloat16),
                    ((0, kp - k), (0, cp - c_out)))             # (Kp, Cp) bf16

    tk = _pick_tile(kp, max_tk, 128)           # reduction tile
    w_bytes = kp * cp * 2
    flops = 2 * n * hw * kp * cp

    if normalize:
        tm = _pick_tile(hw, max_tm, 8)         # pass-1 row tile (lane axis is Cp)
        grid = (n, hw // tm, kp // tk)
        p_spec = pl.BlockSpec((1, tm, tk), lambda i, r, kk: (i, r, kk))
        w_spec = pl.BlockSpec((kp, cp), lambda i, r, kk: (0, 0))   # resident weight
        y_spec = pl.BlockSpec((1, tm, cp), lambda i, r, kk: (i, r, 0))
        mom_spec = pl.BlockSpec((1, 1, cp), lambda i, r, kk: (i, 0, 0))

        y, sums, sqs = pl.pallas_call(
            functools.partial(_conv_moments_kernel, tk=tk),
            out_shape=(jax.ShapeDtypeStruct((n, hw, cp), jnp.bfloat16),
                       jax.ShapeDtypeStruct((n, 1, cp), jnp.float32),
                       jax.ShapeDtypeStruct((n, 1, cp), jnp.float32)),
            grid_spec=pltpu.PrefetchScalarGridSpec(
                num_scalar_prefetch=0, grid=grid,
                in_specs=[p_spec, w_spec],
                out_specs=[y_spec, mom_spec, mom_spec],
                scratch_shapes=[pltpu.VMEM((tm, cp), jnp.float32)]),
            compiler_params=pltpu.CompilerParams(
                dimension_semantics=("parallel", "arbitrary", "arbitrary"),
                vmem_limit_bytes=_vmem_limit(2 * tm * tk * 2, 2 * w_bytes,
                                             2 * tm * cp * 2, tm * cp * 4,
                                             4 * cp * 4)),
            cost_estimate=pl.CostEstimate(
                flops=flops, transcendentals=0,
                bytes_accessed=n * hw * kp * 2 + w_bytes
                               + n * hw * cp * 2 + 2 * n * cp * 4),
        )(patches, w_mat)

        # Per-image InstanceNorm constants from the exact f32 moments (tiny op).
        inv_hw = 1.0 / hw
        mean = sums * inv_hw                                    # (n, 1, Cp)
        var = jnp.maximum(sqs * inv_hw - mean * mean, 0.0)      # biased variance
        scale = lax.rsqrt(var + _EPS)
        shift = -mean * scale

        # Pass 2: FMA + LeakyReLU, output written channel-major (lane axis = HW).
        tm2 = _pick_tile(hw, max(max_tm, 128), 128)             # 128-aligned or full
        y2_spec = pl.BlockSpec((1, tm2, cp), lambda i, r: (i, r, 0))
        ss_spec = pl.BlockSpec((1, 1, cp), lambda i, r: (i, 0, 0))
        o2_spec = pl.BlockSpec((1, c_out, tm2), lambda i, r: (i, 0, r))
        out = pl.pallas_call(
            _norm_lrelu_kernel,
            out_shape=jax.ShapeDtypeStruct((n, c_out, hw), jnp.float32),
            grid_spec=pltpu.PrefetchScalarGridSpec(
                num_scalar_prefetch=0, grid=(n, hw // tm2),
                in_specs=[y2_spec, ss_spec, ss_spec],
                out_specs=o2_spec),
            compiler_params=pltpu.CompilerParams(
                dimension_semantics=("parallel", "parallel"),
                vmem_limit_bytes=_vmem_limit(2 * tm2 * cp * 2, 4 * cp * 4,
                                             2 * c_out * tm2 * 4)),
            cost_estimate=pl.CostEstimate(
                flops=4 * n * hw * cp, transcendentals=0,
                bytes_accessed=n * hw * cp * 2 + n * hw * c_out * 4
                               + 2 * n * cp * 4),
        )(y, scale, shift)
    else:
        # Transposed output blocks need a lane-dense row tile (mult of 128 or full).
        tm = _pick_tile(hw, max_tm, 128)
        grid = (n, hw // tm, kp // tk)
        p_spec = pl.BlockSpec((1, tm, tk), lambda i, r, kk: (i, r, kk))
        w_spec = pl.BlockSpec((kp, cp), lambda i, r, kk: (0, 0))
        o_spec = pl.BlockSpec((1, c_out, tm), lambda i, r, kk: (i, 0, r))
        b = jnp.zeros((c_out,), jnp.float32) if bias is None else bias.astype(jnp.float32)
        b = jnp.pad(b, (0, cp - c_out)).reshape(1, cp)
        b_spec = pl.BlockSpec((1, cp), lambda i, r, kk: (0, 0))

        out = pl.pallas_call(
            functools.partial(_conv_bias_kernel, tk=tk),
            out_shape=jax.ShapeDtypeStruct((n, c_out, hw), jnp.float32),
            grid_spec=pltpu.PrefetchScalarGridSpec(
                num_scalar_prefetch=0, grid=grid,
                in_specs=[p_spec, w_spec, b_spec],
                out_specs=o_spec,
                scratch_shapes=[pltpu.VMEM((tm, cp), jnp.float32)]),
            compiler_params=pltpu.CompilerParams(
                dimension_semantics=("parallel", "parallel", "arbitrary"),
                vmem_limit_bytes=_vmem_limit(2 * tm * tk * 2, 2 * w_bytes,
                                             2 * c_out * tm * 4, tm * cp * 4,
                                             2 * cp * 4)),
            cost_estimate=pl.CostEstimate(
                flops=flops, transcendentals=0,
                bytes_accessed=n * hw * kp * 2 + w_bytes + n * hw * c_out * 4),
        )(patches, w_mat, b)

    # (N, C_out, HW) -> (N, C_out, Ho, Wo): pure reshape, no transpose / slice pass.
    return out.reshape(n, c_out, ho, wo)


# ---------------------------------------------------------------------------
# Pure-JAX reference (bf16 conv operands to mirror the kernel's MXU dtype)
# ---------------------------------------------------------------------------
def _reference(x, weight, bias, normalize):
    y = lax.conv_general_dilated(
        x.astype(jnp.bfloat16), weight.astype(jnp.bfloat16),
        window_strides=(2, 2), padding=((1, 1), (1, 1)),
        dimension_numbers=("NCHW", "OIHW", "NCHW"),
        preferred_element_type=jnp.float32)
    if normalize:
        mean = jnp.mean(y, axis=(2, 3), keepdims=True)
        var = jnp.mean((y - mean) ** 2, axis=(2, 3), keepdims=True)
        y = (y - mean) / jnp.sqrt(var + _EPS)
    else:
        y = y + bias.reshape(1, -1, 1, 1)
    return jnp.where(y > 0, y, _SLOPE * y)


if __name__ == "__main__":
    key = jax.random.PRNGKey(0)
    k_x, k_w, k_b, k_x2, k_w2, k_b2 = jax.random.split(key, 6)

    # --- config 1: the small canonical test shape (single tile per image) ---
    N, C_IN, C_OUT, H, W = 2, 4, 8, 16, 16
    x = jax.random.normal(k_x, (N, C_IN, H, W), dtype=jnp.float32)
    weight = jax.random.normal(k_w, (C_OUT, C_IN, 4, 4), dtype=jnp.float32) * 0.05
    bias = jax.random.normal(k_b, (C_OUT,), dtype=jnp.float32) * 0.05

    out = jax.block_until_ready(down_block(x, weight, normalize=True))
    ref = _reference(x, weight, bias, normalize=True)
    assert out.shape == (N, C_OUT, H // 2, W // 2)
    assert jnp.allclose(out, ref, rtol=2e-2, atol=2e-2)

    out_nb = jax.block_until_ready(down_block(x, weight, bias, normalize=False))
    ref_nb = _reference(x, weight, bias, normalize=False)
    assert jnp.allclose(out_nb, ref_nb, rtol=2e-2, atol=2e-2)

    # --- config 2: force the multi-tile path (several row tiles, 2 K tiles) ---
    C_IN2, C_OUT2 = 16, 8                      # K = 256 -> 2 K-tiles with max_tk=128
    x2 = jax.random.normal(k_x2, (N, C_IN2, H, W), dtype=jnp.float32)
    weight2 = jax.random.normal(k_w2, (C_OUT2, C_IN2, 4, 4), dtype=jnp.float32) * 0.05
    bias2 = jax.random.normal(k_b2, (C_OUT2,), dtype=jnp.float32) * 0.05

    out2 = jax.block_until_ready(
        down_block(x2, weight2, normalize=True, max_tm=16, max_tk=128))
    ref2 = _reference(x2, weight2, bias2, normalize=True)
    assert jnp.allclose(out2, ref2, rtol=2e-2, atol=2e-2)

    out2_nb = jax.block_until_ready(
        down_block(x2, weight2, bias2, normalize=False, max_tm=16, max_tk=128))
    ref2_nb = _reference(x2, weight2, bias2, normalize=False)
    assert jnp.allclose(out2_nb, ref2_nb, rtol=2e-2, atol=2e-2)

    print("KERNEL_OK")
</pallas_src>

<mosaic_0001>
module attributes {stable_mosaic.version = 11 : i64} {
  func.func @_conv_moments_kernel(%arg0: i32, %arg1: i32, %arg2: i32, %arg3: memref<1x64x128xbf16, #tpu.memory_space<vmem>>, %arg4: memref<128x128xbf16, #tpu.memory_space<vmem>>, %arg5: memref<1x64x128xbf16, #tpu.memory_space<vmem>>, %arg6: memref<1x1x128xf32, #tpu.memory_space<vmem>>, %arg7: memref<1x1x128xf32, #tpu.memory_space<vmem>>, %arg8: memref<64x128xf32, #tpu.memory_space<vmem>>) attributes {dimension_semantics = [#tpu.dimension_semantics<parallel>, #tpu.dimension_semantics<arbitrary>, #tpu.dimension_semantics<arbitrary>], iteration_bounds = array<i64: 2, 1, 1>, scalar_prefetch = 0 : i64, scratch_operands = 1 : i64, tpu.core_type = #tpu.core_type<tc>, window_params = [{transform_indices = @transform_0, window_bounds = array<i64: 1, 64, 128>}, {pipeline_mode = #tpu.pipeline_mode<synchronous>, transform_indices = @transform_1, window_bounds = array<i64: 128, 128>}, {transform_indices = @transform_2, window_bounds = array<i64: 1, 64, 128>}, {transform_indices = @transform_3, window_bounds = array<i64: 1, 1, 128>}, {transform_indices = @transform_4, window_bounds = array<i64: 1, 1, 128>}]} {
    %c0_i32 = arith.constant 0 : i32
    %0 = arith.cmpi eq, %arg2, %c0_i32 : i32
    %1 = arith.extui %0 : i1 to i32
    %c0_i32_0 = arith.constant 0 : i32
    %2 = arith.cmpi ne, %1, %c0_i32_0 : i32
    scf.if %2 {
      %cst_10 = arith.constant 0.000000e+00 : f32
      %16 = vector.broadcast %cst_10 : f32 to vector<64x128xf32>
      %c0_11 = arith.constant 0 : index
      %c0_12 = arith.constant 0 : index
      %17 = vector.load %arg8[%c0_11, %c0_12] : memref<64x128xf32, #tpu.memory_space<vmem>>, vector<64x128xf32>
      tpu.vector_store %arg8[%c0_11, %c0_12], %16 {strides = array<i32>} : memref<64x128xf32, #tpu.memory_space<vmem>>, vector<64x128xf32>,
    } else {
    }
    %c128_i32 = arith.constant 128 : i32
    %3 = arith.muli %arg2, %c128_i32 : i32
    %4 = tpu.assume_multiple %3, 128 : i32
    %c0 = arith.constant 0 : index
    %c0_1 = arith.constant 0 : index
    %5 = vector.load %arg8[%c0, %c0_1] : memref<64x128xf32, #tpu.memory_space<vmem>>, vector<64x128xf32>
    %c0_2 = arith.constant 0 : index
    %c0_3 = arith.constant 0 : index
    %c0_4 = arith.constant 0 : index
    %6 = vector.load %arg3[%c0_2, %c0_3, %c0_4] : memref<1x64x128xbf16, #tpu.memory_space<vmem>>, vector<1x64x128xbf16>
    %7 = vector.shape_cast %6 : vector<1x64x128xbf16> to vector<64x128xbf16>
    %8 = arith.index_cast %4 : i32 to index
    %c0_5 = arith.constant 0 : index
    %9 = vector.load %arg4[%8, %c0_5] : memref<128x128xbf16, #tpu.memory_space<vmem>>, vector<128x128xbf16>
    %cst = arith.constant dense<0.000000e+00> : vector<64x128xf32>
    %10 = tpu.matmul %7, %9, %cst {dimension_numbers = #tpu.dot_dimension_numbers<[1], [0], [0], [1], [0, 0, 1, 1], [], []>} : vector<64x128xbf16>, vector<128x128xbf16>, vector<64x128xf32> -> vector<64x128xf32>
    %11 = arith.addf %5, %10 : vector<64x128xf32>
    %c0_6 = arith.constant 0 : index
    %c0_7 = arith.constant 0 : index
    %12 = vector.load %arg8[%c0_6, %c0_7] : memref<64x128xf32, #tpu.memory_space<vmem>>, vector<64x128xf32>
    tpu.vector_store %arg8[%c0_6, %c0_7], %11 {strides = array<i32>} : memref<64x128xf32, #tpu.memory_space<vmem>>, vector<64x128xf32>,
    %c0_i32_8 = arith.constant 0 : i32
    %13 = arith.cmpi eq, %arg2, %c0_i32_8 : i32
    %14 = arith.extui %13 : i1 to i32
    %c0_i32_9 = arith.constant 0 : i32
    %15 = arith.cmpi ne, %14, %c0_i32_9 : i32
    scf.if %15 {
      %c0_10 = arith.constant 0 : index
      %c0_11 = arith.constant 0 : index
      %16 = vector.load %arg8[%c0_10, %c0_11] : memref<64x128xf32, #tpu.memory_space<vmem>>, vector<64x128xf32>
      %17 = arith.truncf %16 : vector<64x128xf32> to vector<64x128xbf16>
      %c0_12 = arith.constant 0 : index
      %c0_13 = arith.constant 0 : index
      %c0_14 = arith.constant 0 : index
      %18 = vector.load %arg5[%c0_12, %c0_13, %c0_14] : memref<1x64x128xbf16, #tpu.memory_space<vmem>>, vector<1x64x128xbf16>
      %19 = vector.shape_cast %18 : vector<1x64x128xbf16> to vector<64x128xbf16>
      %20 = vector.shape_cast %17 : vector<64x128xbf16> to vector<1x64x128xbf16>
      tpu.vector_store %arg5[%c0_12, %c0_13, %c0_14], %20 {strides = array<i32>} : memref<1x64x128xbf16, #tpu.memory_space<vmem>>, vector<1x64x128xbf16>,
      %c0_i32_15 = arith.constant 0 : i32
      %21 = arith.cmpi eq, %arg1, %c0_i32_15 : i32
      %22 = arith.extui %21 : i1 to i32
      %c0_i32_16 = arith.constant 0 : i32
      %23 = arith.cmpi ne, %22, %c0_i32_16 : i32
      scf.if %23 {
        %cst_31 = arith.constant 0.000000e+00 : f32
        %41 = vector.broadcast %cst_31 : f32 to vector<1x1x128xf32>
        %c0_32 = arith.constant 0 : index
        %c0_33 = arith.constant 0 : index
        %c0_34 = arith.constant 0 : index
        %42 = vector.load %arg6[%c0_32, %c0_33, %c0_34] : memref<1x1x128xf32, #tpu.memory_space<vmem>>, vector<1x1x128xf32>
        tpu.vector_store %arg6[%c0_32, %c0_33, %c0_34], %41 {strides = array<i32>} : memref<1x1x128xf32, #tpu.memory_space<vmem>>, vector<1x1x128xf32>,
        %cst_35 = arith.constant 0.000000e+00 : f32
        %43 = vector.broadcast %cst_35 : f32 to vector<1x1x128xf32>
        %c0_36 = arith.constant 0 : index
        %c0_37 = arith.constant 0 : index
        %c0_38 = arith.constant 0 : index
        %44 = vector.load %arg7[%c0_36, %c0_37, %c0_38] : memref<1x1x128xf32, #tpu.memory_space<vmem>>, vector<1x1x128xf32>
        tpu.vector_store %arg7[%c0_36, %c0_37, %c0_38], %43 {strides = array<i32>} : memref<1x1x128xf32, #tpu.memory_space<vmem>>, vector<1x1x128xf32>,
      } else {
      }
      %c0_17 = arith.constant 0 : index
      %c0_18 = arith.constant 0 : index
      %c0_19 = arith.constant 0 : index
      %24 = vector.load %arg6[%c0_17, %c0_18, %c0_19] : memref<1x1x128xf32, #tpu.memory_space<vmem>>, vector<1x1x128xf32>
      %25 = vector.shape_cast %24 : vector<1x1x128xf32> to vector<1x128xf32>
      %cst_20 = arith.constant dense<0.000000e+00> : vector<128xf32>
      %26 = vector.multi_reduction <add>, %16, %cst_20 [0] : vector<64x128xf32> to vector<128xf32>
      %27 = vector.shape_cast %26 : vector<128xf32> to vector<1x128xf32>
      %28 = arith.addf %25, %27 : vector<1x128xf32>
      %c0_21 = arith.constant 0 : index
      %c0_22 = arith.constant 0 : index
      %c0_23 = arith.constant 0 : index
      %29 = vector.load %arg6[%c0_21, %c0_22, %c0_23] : memref<1x1x128xf32, #tpu.memory_space<vmem>>, vector<1x1x128xf32>
      %30 = vector.shape_cast %29 : vector<1x1x128xf32> to vector<1x128xf32>
      %31 = vector.shape_cast %28 : vector<1x128xf32> to vector<1x1x128xf32>
      tpu.vector_store %arg6[%c0_21, %c0_22, %c0_23], %31 {strides = array<i32>} : memref<1x1x128xf32, #tpu.memory_space<vmem>>, vector<1x1x128xf32>,
      %c0_24 = arith.constant 0 : index
      %c0_25 = arith.constant 0 : index
      %c0_26 = arith.constant 0 : index
      %32 = vector.load %arg7[%c0_24, %c0_25, %c0_26] : memref<1x1x128xf32, #tpu.memory_space<vmem>>, vector<1x1x128xf32>
      %33 = vector.shape_cast %32 : vector<1x1x128xf32> to vector<1x128xf32>
      %34 = arith.mulf %16, %16 : vector<64x128xf32>
      %cst_27 = arith.constant dense<0.000000e+00> : vector<128xf32>
      %35 = vector.multi_reduction <add>, %34, %cst_27 [0] : vector<64x128xf32> to vector<128xf32>
      %36 = vector.shape_cast %35 : vector<128xf32> to vector<1x128xf32>
      %37 = arith.addf %33, %36 : vector<1x128xf32>
      %c0_28 = arith.constant 0 : index
      %c0_29 = arith.constant 0 : index
      %c0_30 = arith.constant 0 : index
      %38 = vector.load %arg7[%c0_28, %c0_29, %c0_30] : memref<1x1x128xf32, #tpu.memory_space<vmem>>, vector<1x1x128xf32>
      %39 = vector.shape_cast %38 : vector<1x1x128xf32> to vector<1x128xf32>
      %40 = vector.shape_cast %37 : vector<1x128xf32> to vector<1x1x128xf32>
      tpu.vector_store %arg7[%c0_28, %c0_29, %c0_30], %40 {strides = array<i32>} : memref<1x1x128xf32, #tpu.memory_space<vmem>>, vector<1x1x128xf32>,
    } else {
    }
    return
  }
  func.func @transform_0(%arg0: i32, %arg1: i32, %arg2: i32) -> (i32, i32, i32) {
    %c0_i32 = arith.constant 0 : i32
    return %arg0, %arg1, %arg2 : i32, i32, i32
  }
  func.func @transform_1(%arg0: i32, %arg1: i32, %arg2: i32) -> (i32, i32) {
    %c0_i32 = arith.constant 0 : i32
    %c0_i32_0 = arith.constant 0 : i32
    %c0_i32_1 = arith.constant 0 : i32
    return %c0_i32, %c0_i32_0 : i32, i32
  }
  func.func @transform_2(%arg0: i32, %arg1: i32, %arg2: i32) -> (i32, i32, i32) {
    %c0_i32 = arith.constant 0 : i32
    %c0_i32_0 = arith.constant 0 : i32
    return %arg0, %arg1, %c0_i32 : i32, i32, i32
  }
  func.func @transform_3(%arg0: i32, %arg1: i32, %arg2: i32) -> (i32, i32, i32) {
    %c0_i32 = arith.constant 0 : i32
    %c0_i32_0 = arith.constant 0 : i32
    %c0_i32_1 = arith.constant 0 : i32
    return %arg0, %c0_i32, %c0_i32_0 : i32, i32, i32
  }
  func.func @transform_4(%arg0: i32, %arg1: i32, %arg2: i32) -> (i32, i32, i32) {
    %c0_i32 = arith.constant 0 : i32
    %c0_i32_0 = arith.constant 0 : i32
    %c0_i32_1 = arith.constant 0 : i32
    return %arg0, %c0_i32, %c0_i32_0 : i32, i32, i32
  }
}

module attributes {stable_mosaic.version = 11 : i64} {
  func.func @_norm_lrelu_kernel(%arg0: i32, %arg1: i32, %arg2: memref<1x64x128xbf16, #tpu.memory_space<vmem>>, %arg3: memref<1x1x128xf32, #tpu.memory_space<vmem>>, %arg4: memref<1x1x128xf32, #tpu.memory_space<vmem>>, %arg5: memref<1x8x64xf32, #tpu.memory_space<vmem>>) attributes {dimension_semantics = [#tpu.dimension_semantics<parallel>, #tpu.dimension_semantics<parallel>], iteration_bounds = array<i64: 2, 1>, scalar_prefetch = 0 : i64, scratch_operands = 0 : i64, tpu.core_type = #tpu.core_type<tc>, window_params = [{transform_indices = @transform_0, window_bounds = array<i64: 1, 64, 128>}, {transform_indices = @transform_1, window_bounds = array<i64: 1, 1, 128>}, {transform_indices = @transform_2, window_bounds = array<i64: 1, 1, 128>}, {transform_indices = @transform_3, window_bounds = array<i64: 1, 8, 64>}]} {
    %c0 = arith.constant 0 : index
    %c0_0 = arith.constant 0 : index
    %c0_1 = arith.constant 0 : index
    %0 = vector.load %arg2[%c0, %c0_0, %c0_1] : memref<1x64x128xbf16, #tpu.memory_space<vmem>>, vector<1x64x128xbf16>
    %1 = vector.shape_cast %0 : vector<1x64x128xbf16> to vector<64x128xbf16>
    %2 = arith.extf %1 : vector<64x128xbf16> to vector<64x128xf32>
    %c0_2 = arith.constant 0 : index
    %c0_3 = arith.constant 0 : index
    %c0_4 = arith.constant 0 : index
    %3 = vector.load %arg3[%c0_2, %c0_3, %c0_4] : memref<1x1x128xf32, #tpu.memory_space<vmem>>, vector<1x1x128xf32>
    %4 = vector.shape_cast %3 : vector<1x1x128xf32> to vector<1x128xf32>
    %5 = vector.broadcast %4 : vector<1x128xf32> to vector<64x128xf32>
    %6 = arith.mulf %2, %5 : vector<64x128xf32>
    %c0_5 = arith.constant 0 : index
    %c0_6 = arith.constant 0 : index
    %c0_7 = arith.constant 0 : index
    %7 = vector.load %arg4[%c0_5, %c0_6, %c0_7] : memref<1x1x128xf32, #tpu.memory_space<vmem>>, vector<1x1x128xf32>
    %8 = vector.shape_cast %7 : vector<1x1x128xf32> to vector<1x128xf32>
    %9 = vector.broadcast %8 : vector<1x128xf32> to vector<64x128xf32>
    %10 = arith.addf %6, %9 : vector<64x128xf32>
    %cst = arith.constant 0.000000e+00 : f32
    %11 = vector.broadcast %cst : f32 to vector<64x128xf32>
    %12 = arith.cmpf ogt, %10, %11 : vector<64x128xf32>
    %cst_8 = arith.constant 2.000000e-01 : f32
    %13 = vector.broadcast %cst_8 : f32 to vector<64x128xf32>
    %14 = arith.mulf %13, %10 : vector<64x128xf32>
    %15 = arith.select %12, %10, %14 : vector<64x128xi1>, vector<64x128xf32>
    %16 = tpu.transpose %15, [1, 0] : vector<64x128xf32> -> vector<128x64xf32>
    %17 = vector.extract_strided_slice %16 {offsets = [0, 0], sizes = [8, 64], strides = [1, 1]} : vector<128x64xf32> to vector<8x64xf32>
    %c0_9 = arith.constant 0 : index
    %c0_10 = arith.constant 0 : index
    %c0_11 = arith.constant 0 : index
    %18 = vector.load %arg5[%c0_9, %c0_10, %c0_11] : memref<1x8x64xf32, #tpu.memory_space<vmem>>, vector<1x8x64xf32>
    %19 = vector.shape_cast %18 : vector<1x8x64xf32> to vector<8x64xf32>
    %20 = vector.shape_cast %17 : vector<8x64xf32> to vector<1x8x64xf32>
    tpu.vector_store %arg5[%c0_9, %c0_10, %c0_11], %20 {strides = array<i32>} : memref<1x8x64xf32, #tpu.memory_space<vmem>>, vector<1x8x64xf32>,
    return
  }
  func.func @transform_0(%arg0: i32, %arg1: i32) -> (i32, i32, i32) {
    %c0_i32 = arith.constant 0 : i32
    %c0_i32_0 = arith.constant 0 : i32
    return %arg0, %arg1, %c0_i32 : i32, i32, i32
  }
  func.func @transform_1(%arg0: i32, %arg1: i32) -> (i32, i32, i32) {
    %c0_i32 = arith.constant 0 : i32
    %c0_i32_0 = arith.constant 0 : i32
    %c0_i32_1 = arith.constant 0 : i32
    return %arg0, %c0_i32, %c0_i32_0 : i32, i32, i32
  }
  func.func @transform_2(%arg0: i32, %arg1: i32) -> (i32, i32, i32) {
    %c0_i32 = arith.constant 0 : i32
    %c0_i32_0 = arith.constant 0 : i32
    %c0_i32_1 = arith.constant 0 : i32
    return %arg0, %c0_i32, %c0_i32_0 : i32, i32, i32
  }
  func.func @transform_3(%arg0: i32, %arg1: i32) -> (i32, i32, i32) {
    %c0_i32 = arith.constant 0 : i32
    %c0_i32_0 = arith.constant 0 : i32
    return %arg0, %c0_i32, %arg1 : i32, i32, i32
  }
}

</mosaic_0001>

<bundles_post_ra>
// kernel: down_block.3
= control target key start
LH: loop header
LB: loop body
LE: loop exit
PB: predicated region body
PF: predicated region fallthrough
CT: control target
= control target key end

     0   :  { %s533_s12 = smov 0   ;;  %s535_s13 = smov 0   ;;  %s578_s0 = inlined_call_operand.vmem [shape: bf16[2,64,128], index: 0, kind: input, shape index: {}]   ;;  %s579_s1 = inlined_call_operand.vmem [shape: f32[2,1,128], index: 1, kind: input, shape index: {}]   ;;  %s580_s2 = inlined_call_operand.vmem [shape: f32[2,1,128], index: 2, kind: input, shape index: {}]   ;;  %s581_s3 = inlined_call_operand.vmem [shape: f32[2,8,64], index: 3, kind: output, shape index: {}]  }
   0x1   :  { %s537_s14 = smov 0  }
   0x2 LB: > { %s25_s15 = sadd.s32 1, %s507_s13  ;;  %p436_p0 = scmp.ge.s32.totalorder %s511_s14, 1  ;;  %s511_s14 = sphi %s537_s14, %s13_s14   ;;  %s507_s13 = sphi %s535_s13, %s583_s13   ;;  %s503_s12 = sphi %s533_s12, %s582_s12  }
   0x3   : > { %p27_p1 = scmp.ge.s32.totalorder %s25_s15, 2  ;;  %p174_p2 = scmp.lt.s32.totalorder %s511_s14, 3 }
   0x5   : > { %s585_s15 = smov (%p27_p1, %s25_s15), 0  ;;  %p175_p3 = pnand %p436_p0, %p174_p2 }
   0x6   : > { %p211_p4 = scmp.lt.s32.totalorder (!%p175_p3), %s503_s12, 1  ;;  %vm335_vm8 = vcmask (!%p175_p3), 523264  }
   0x7   : > { %178 = sbr.rel (%p175_p3) target bundleno = 157 (0x9d), region = 32 }
   0xe   : > { %s587_s12 = smov (!%p211_p4, %s503_s12), 1 }
   0xf   : > { %s444_s16 = sshll.u32 %s587_s12, 5  ;;  %s222_s19 = scalar_lea.vmem %s579_s1, %s587_s12 }
  0x10   : > { %s218_s22 = scalar_lea.vmem %s578_s0, %s444_s16  ;;  %s225_s25 = scalar_lea.vmem %s580_s2, %s587_s12  ;;  %v440_v1 = vld [vmem:[%s222_s19] ss:$0 sm:$0xff] }
  0x11   : > { %v446_v0 = vld [vmem:[%s218_s22] sm:$0xff]   ;;  %v461_v2 = vld [vmem:[%s218_s22 + $0x8] sm:$0xff]   ;;  %v462_v11 = vld [vmem:[%s218_s22 + $0x10] sm:$0xff]   ;;  %s439_s26 = sshll.u32 %s587_s12, 3 }
  0x12   : > { %v447_v3 = vunpack.c.l.bf16 %v446_v0  ;;  %v448_v4 = vunpack.c.h.bf16 %v446_v0  ;;  %v451_v5 = vunpack.c.l.bf16 %v461_v2  ;;  %v441_v6 = vld [vmem:[%s225_s25] ss:$0 sm:$0xff]  ;;  %v452_v7 = vunpack.c.h.bf16 %v461_v2  ;;  %v463_v25 = vld [vmem:[%s218_s22 + $0x18] sm:$0xff]   ;;  %s232_s29 = scalar_lea.vmem %s581_s3, %s439_s26 }
  0x13   : > { %v455_v15 = vunpack.c.l.bf16 %v462_v11  ;;  %v456_v20 = vunpack.c.h.bf16 %v462_v11  ;;  %v459_v26 = vunpack.c.l.bf16 %v463_v25  ;;  %v460_v31 = vunpack.c.h.bf16 %v463_v25 }
  0x14   : > { %v256_v8 = vmul.f32 %v447_v3, %v440_v1  ;;  %v257_v9 = vmul.f32 %v448_v4, %v440_v1  ;;  %v258_v10 = vmul.f32 %v451_v5, %v440_v1  ;;  %v259_v14 = vmul.f32 %v452_v7, %v440_v1 }
  0x15   : > { %v260_v24 = vmul.f32 %v455_v15, %v440_v1  ;;  %v261_v30 = vmul.f32 %v456_v20, %v440_v1  ;;  %v262_v35 = vmul.f32 %v459_v26, %v440_v1  ;;  %v263_v39 = vmul.f32 %v460_v31, %v440_v1 }
  0x16   : > { %v271_v12 = vadd.f32 %v441_v6, %v256_v8  ;;  %v272_v13 = vadd.f32 %v441_v6, %v257_v9  ;;  %v273_v18 = vadd.f32 %v441_v6, %v258_v10  ;;  %v274_v23 = vadd.f32 %v441_v6, %v259_v14 }
  0x17   : > { %v275_v29 = vadd.f32 %v441_v6, %v260_v24  ;;  %v276_v34 = vadd.f32 %v441_v6, %v261_v30  ;;  %v277_v38 = vadd.f32 %v441_v6, %v262_v35  ;;  %v278_v42 = vadd.f32 %v441_v6, %v263_v39 }
  0x18   : > { %vm279_vm0 = vcmp.gt.f32.partialorder %v271_v12, 0.0  ;;  %v287_v16 = vmul.f32 0.2, %v271_v12  ;;  %v288_v17 = vmul.f32 0.2, %v272_v13  ;;  %vm280_vm1 = vcmp.gt.f32.partialorder %v272_v13, 0.0 }
  0x19   : > { %v289_v22 = vmul.f32 0.2, %v273_v18  ;;  %vm281_vm2 = vcmp.gt.f32.partialorder %v273_v18, 0.0  ;;  %v290_v28 = vmul.f32 0.2, %v274_v23  ;;  %vm282_vm3 = vcmp.gt.f32.partialorder %v274_v23, 0.0 }
  0x1a   : > { %v295_v19 = vsel %vm279_vm0, %v271_v12, %v287_v16  ;;  %v296_v21 = vsel %vm280_vm1, %v272_v13, %v288_v17  ;;  %v291_v33 = vmul.f32 0.2, %v275_v29  ;;  %vm283_vm4 = vcmp.gt.f32.partialorder %v275_v29, 0.0 }
  0x1b   : > { %303 = vxpose.xlu0.b32.start [1/8] (short) (narrow) %v295_v19, 8  ;;  %v297_v27 = vsel %vm281_vm2, %v273_v18, %v289_v22  ;;  %v298_v32 = vsel %vm282_vm3, %v274_v23, %v290_v28  ;;  %v292_v37 = vmul.f32 0.2, %v276_v34  ;;  %vm284_vm5 = vcmp.gt.f32.partialorder %v276_v34, 0.0 }
  0x1c   : > { %v299_v36 = vsel %vm283_vm4, %v275_v29, %v291_v33  ;;  %v293_v41 = vmul.f32 0.2, %v277_v38  ;;  %vm285_vm6 = vcmp.gt.f32.partialorder %v277_v38, 0.0  ;;  %v294_v44 = vmul.f32 0.2, %v278_v42 }
  0x1d   : > { %v300_v40 = vsel %vm284_vm5, %v276_v34, %v292_v37  ;;  %vm286_vm7 = vcmp.gt.f32.partialorder %v278_v42, 0.0 }
  0x1e   : > { %v301_v43 = vsel %vm285_vm6, %v277_v38, %v293_v41  ;;  %v302_v45 = vsel %vm286_vm7, %v278_v42, %v294_v44 }
  0x1f   : > { %304 = vxpose.xlu0.b32.cont [2/8] (short) (narrow) %v296_v21, 8 }
  0x23   : > { %305 = vxpose.xlu0.b32.cont [3/8] (short) (narrow) %v297_v27, 8 }
  0x27   : > { %306 = vxpose.xlu0.b32.cont [4/8] (short) (narrow) %v298_v32, 8 }
  0x2b   : > { %307 = vxpose.xlu0.b32.cont [5/8] (short) (narrow) %v299_v36, 8 }
  0x2f   : > { %308 = vxpose.xlu0.b32.cont [6/8] (short) (narrow) %v300_v40, 8 }
  0x33   : > { %309 = vxpose.xlu0.b32.cont [7/8] (short) (narrow) %v301_v43, 8 }
  0x37   : > { %310 = vxpose.xlu0.b32.end [8/8] (short) (narrow) %v302_v45, 8 }
  0x9b   : > { %v319_v46 = vpop.trf.xlu0 }
  0x9c   : > { %336 = vst.msk [vmem:[%s232_s29] sm:$0xff] %vm335_vm8, %v319_v46 }
  0x9d PF: > { %s13_s14 = sadd.s32 1, %s511_s14   ;;  %s582_s12 = smov %s507_s13 }
  0x9e   : > { %p10_p5 = scmp.ge.s32.totalorder %s13_s14, 4   ;;  %s583_s13 = smov %s585_s15 }
  0xa0   :  { %12 = sbr.rel (!%p10_p5) target bundleno = 2 (0x2), region = 68 }

// kernel: down_block.2
= control target key start
LH: loop header
LB: loop body
LE: loop exit
PB: predicated region body
PF: predicated region fallthrough
CT: control target
= control target key end

     0   :  { %s920_s15 = smov 0   ;;  %s922_s16 = smov 0   ;;  %s1008_s0 = inlined_call_operand.vmem [shape: bf16[2,64,128], index: 0, kind: input, shape index: {}]   ;;  %s1009_s1 = inlined_call_operand.vmem [shape: bf16[128,128], index: 1, kind: input, shape index: {}]   ;;  %s1010_s2 = inlined_call_operand.vmem [shape: bf16[2,64,128], index: 2, kind: output, shape index: {0}]   ;;  %s1011_s3 = inlined_call_operand.vmem [shape: f32[2,1,128], index: 3, kind: output, shape index: {1}]   ;;  %s1012_s4 = inlined_call_operand.vmem [shape: f32[2,1,128], index: 4, kind: output, shape index: {2}]  }
   0x1   :  { %s924_s17 = smov 0  }
   0x2 LB: > { %s34_s18 = sadd.s32 1, %s888_s16  ;;  %p721_p0 = scmp.ge.s32.totalorder %s892_s17, 1  ;;  %s892_s17 = sphi %s924_s17, %s15_s17   ;;  %s888_s16 = sphi %s922_s16, %s1014_s16   ;;  %s884_s15 = sphi %s920_s15, %s1013_s15  }
   0x3   : > { %p36_p1 = scmp.ge.s32.totalorder %s34_s18, 2  ;;  %p200_p2 = scmp.lt.s32.totalorder %s892_s17, 3 }
   0x5   : > { %s1016_s18 = smov (%p36_p1, %s34_s18), 0  ;;  %p201_p3 = pnand %p721_p0, %p200_p2 }
   0x6   : > { %v858_v0 = vld [vmem:[%s1009_s1] sm:$0xff] (!%p201_p3)   ;;  %p244_p4 = scmp.lt.s32.totalorder (!%p201_p3), %s884_s15, 1  ;;  %v859_v1 = vld [vmem:[%s1009_s1 + $0x8] sm:$0xff] (!%p201_p3)   ;;  %v860_v2 = vld [vmem:[%s1009_s1 + $0x10] sm:$0xff] (!%p201_p3)   ;;  %v894_v12 = vmov (!%p201_p3), 0.0  }
   0x7   : > { %204 = sbr.rel (%p201_p3) target bundleno = 285 (0x11d), region = 28  ;;  %793 = vmatprep.subr.bf16.mxu0 (!%p201_p3), %v858_v0  ;;  %817 = vmatprep.subr.bf16.mxu1 (!%p201_p3), %v858_v0  ;;  %v861_v3 = vld [vmem:[%s1009_s1 + $0x18] sm:$0xff] (!%p201_p3)   ;;  %v862_v6 = vld [vmem:[%s1009_s1 + $0x20] sm:$0xff] (!%p201_p3)   ;;  %v863_v7 = vld [vmem:[%s1009_s1 + $0x28] sm:$0xff] (!%p201_p3)  }
   0x8   : > { %794 = vmatpush3.bf16.msra.mxu0 (!%p201_p3), %v858_v0  ;;  %825 = vmatpush3.bf16.msra.mxu1 (!%p201_p3), %v858_v0  ;;  %v864_v8 = vld [vmem:[%s1009_s1 + $0x30] sm:$0xff] (!%p201_p3)   ;;  %v865_v9 = vld [vmem:[%s1009_s1 + $0x38] sm:$0xff] (!%p201_p3)  }
   0x9   : > { %795 = vmatprep.subr.bf16.mxu0 (!%p201_p3), %v859_v1  ;;  %818 = vmatprep.subr.bf16.mxu1 (!%p201_p3), %v859_v1 }
   0xc   : > { %796 = vmatpush3.bf16.msra.mxu0 (!%p201_p3), %v859_v1  ;;  %826 = vmatpush3.bf16.msra.mxu1 (!%p201_p3), %v859_v1 }
   0xd   : > { %797 = vmatprep.subr.bf16.mxu0 (!%p201_p3), %v860_v2  ;;  %819 = vmatprep.subr.bf16.mxu1 (!%p201_p3), %v860_v2 }
   0xe   : > { %s1018_s15 = smov (!%p244_p4, %s884_s15), 1 }
   0xf   : > { %s748_s25 = sshll.u32 %s1018_s15, 5  ;;  %s980_s19 = scalar_lea.vmem %s1011_s3, %s1018_s15 }
  0x10   : > { %s955_s28 = scalar_lea.vmem %s1008_s0, %s748_s25  ;;  %798 = vmatpush3.bf16.msra.mxu0 %v860_v2  ;;  %827 = vmatpush3.bf16.msra.mxu1 %v860_v2  ;;  %s986_s22 = scalar_lea.vmem %s1012_s4, %s1018_s15  ;;  %530 = vst [vmem:[%s980_s19] sm:$0x1] %v894_v12 }
  0x11   : > { %v866_v4 = vld [vmem:[%s955_s28] sm:$0xff]   ;;  %v868_v5 = vld [vmem:[%s955_s28 + $0x10] sm:$0xff]   ;;  %799 = vmatprep.subr.bf16.mxu0 %v861_v3  ;;  %820 = vmatprep.subr.bf16.mxu1 %v861_v3  ;;  %v867_v10 = vld [vmem:[%s955_s28 + $0x8] sm:$0xff]   ;;  %531 = vst [vmem:[%s986_s22] sm:$0x1] %v894_v12  ;;  %s264_s26 = scalar_lea.vmem %s1010_s2, %s748_s25 }
  0x12   : > { %809 = vmatprep.mubr.bf16.mxu0 %v866_v4  ;;  %813 = vmatprep.mubr.bf16.mxu1 %v868_v5  ;;  %v869_v11 = vld [vmem:[%s955_s28 + $0x18] sm:$0xff]  }
  0x14   : > { %800 = vmatpush3.bf16.msra.mxu0 %v861_v3  ;;  %828 = vmatpush3.bf16.msra.mxu1 %v861_v3 }
  0x15   : > { %801 = vmatprep.subr.bf16.mxu0 %v862_v6  ;;  %821 = vmatprep.subr.bf16.mxu1 %v862_v6 }
  0x17   : > { %v532_v56 = vld [vmem:[%s980_s19] sm:$0x1] }
  0x18   : > { %802 = vmatpush3.bf16.msra.mxu0 %v862_v6  ;;  %829 = vmatpush3.bf16.msra.mxu1 %v862_v6  ;;  %v548_v59 = vld [vmem:[%s986_s22] sm:$0x1] }
  0x19   : > { %803 = vmatprep.subr.bf16.mxu0 %v863_v7  ;;  %822 = vmatprep.subr.bf16.mxu1 %v863_v7 }
  0x1c   : > { %804 = vmatpush3.bf16.msra.mxu0 %v863_v7  ;;  %830 = vmatpush3.bf16.msra.mxu1 %v863_v7 }
  0x1d   : > { %805 = vmatprep.subr.bf16.mxu0 %v864_v8  ;;  %823 = vmatprep.subr.bf16.mxu1 %v864_v8 }
  0x20   : > { %806 = vmatpush3.bf16.msra.mxu0 %v864_v8  ;;  %831 = vmatpush3.bf16.msra.mxu1 %v864_v8 }
  0x21   : > { %807 = vmatprep.subr.bf16.mxu0 %v865_v9  ;;  %824 = vmatprep.subr.bf16.mxu1 %v865_v9 }
  0x24   : > { %808 = vmatpush3.bf16.msra.mxu0 %v865_v9  ;;  %832 = vmatpush3.bf16.msra.mxu1 %v865_v9 }
  0x27   : > { %810 = vmatmul.mubr.bf16.vlgmr.msra.gmra.mrb[0].mxu0 %v867_v10  ;;  %814 = vmatmul.mubr.bf16.vlgmr.msra.gmra.mrb[0].mxu1 %v869_v11 }
  0xfa   : > { %v811_v13 = vpop.f32.mrb[0].mxu0  ;;  %v815_v14 = vpop.f32.mrb[0].mxu1 }
  0xfb   : > { %v428_v15 = vpop.f32.mrb[1].mxu0  ;;  %v444_v16 = vpop.f32.mrb[1].mxu1  ;;  %v551_v28 = vmul.f32 %v811_v13, %v811_v13  ;;  %v555_v40 = vmul.f32 %v815_v14, %v815_v14 }
  0xfc   : > { %v812_v17 = vpop.f32.mrb[2].mxu0  ;;  %v816_v18 = vpop.f32.mrb[2].mxu1  ;;  %v549_v19 = vmul.f32 %v428_v15, %v428_v15  ;;  %v553_v34 = vmul.f32 %v444_v16, %v444_v16 }
  0xfd   : > { %v766_v20 = vpack.c.bf16 %v812_v17, %v811_v13  ;;  %v431_v21 = vpop.f32.mrb[3].mxu0  ;;  %v776_v22 = vpack.c.bf16 %v816_v18, %v815_v14  ;;  %v447_v23 = vpop.f32.mrb[3].mxu1  ;;  %v552_v31 = vmul.f32 %v812_v17, %v812_v17  ;;  %v556_v43 = vmul.f32 %v816_v18, %v816_v18 }
  0xfe   : > { %v761_v24 = vpack.c.bf16 %v431_v21, %v428_v15  ;;  %v533_v25 = vadd.f32 %v431_v21, %v428_v15  ;;  %v550_v26 = vmul.f32 %v431_v21, %v431_v21  ;;  %v771_v27 = vpack.c.bf16 %v447_v23, %v444_v16 }
  0xff   : > { %778 = vst [vmem:[%s264_s26 + $0x8] sm:$0xff] %v766_v20   ;;  %780 = vst [vmem:[%s264_s26 + $0x18] sm:$0xff] %v776_v22   ;;  %v554_v39 = vmul.f32 %v447_v23, %v447_v23 }
 0x100   : > { %762 = vst [vmem:[%s264_s26] sm:$0xff] %v761_v24   ;;  %v534_v29 = vadd.f32 %v811_v13, %v533_v25  ;;  %v557_v30 = vadd.f32 %v550_v26, %v549_v19  ;;  %779 = vst [vmem:[%s264_s26 + $0x10] sm:$0xff] %v771_v27  }
 0x102   : > { %v558_v32 = vadd.f32 %v557_v30, %v551_v28  ;;  %v535_v33 = vadd.f32 %v812_v17, %v534_v29 }
 0x104   : > { %v536_v35 = vadd.f32 %v535_v33, %v444_v16  ;;  %v559_v36 = vadd.f32 %v558_v32, %v552_v31 }
 0x106   : > { %v560_v37 = vadd.f32 %v559_v36, %v553_v34  ;;  %v537_v38 = vadd.f32 %v536_v35, %v447_v23 }
 0x108   : > { %v538_v41 = vadd.f32 %v815_v14, %v537_v38  ;;  %v561_v42 = vadd.f32 %v560_v37, %v554_v39 }
 0x10a   : > { %v539_v44 = vadd.f32 %v816_v18, %v538_v41  ;;  %v562_v45 = vadd.f32 %v561_v42, %v555_v40 }
 0x10c   : > { %v540_v46 = vrot.slane %v539_v44, 4  ;;  %v563_v47 = vadd.f32 %v562_v45, %v556_v43 }
 0x10e   : > { %v541_v48 = vadd.f32 %v540_v46, %v539_v44  ;;  %v564_v49 = vrot.slane %v563_v47, 4 }
 0x110   : > { %v542_v50 = vrot.slane %v541_v48, 2  ;;  %v565_v51 = vadd.f32 %v564_v49, %v563_v47 }
 0x112   : > { %v543_v52 = vadd.f32 %v542_v50, %v541_v48  ;;  %v566_v53 = vrot.slane %v565_v51, 2 }
 0x114   : > { %v544_v54 = vrot.slane %v543_v52, 1  ;;  %v567_v55 = vadd.f32 %v566_v53, %v565_v51 }
 0x116   : > { %v545_v57 = vadd.f32 %v544_v54, %v543_v52  ;;  %v568_v58 = vrot.slane %v567_v55, 1 }
 0x118   : > { %v546_v60 = vadd.f32 %v545_v57, %v532_v56  ;;  %v569_v61 = vadd.f32 %v568_v58, %v567_v55 }
 0x11a   : > { %547 = vst [vmem:[%s980_s19] sm:$0x1] %v546_v60  ;;  %v570_v62 = vadd.f32 %v569_v61, %v548_v59 }
 0x11c   : > { %571 = vst [vmem:[%s986_s22] sm:$0x1] %v570_v62 }
 0x11d PF: > { %s15_s17 = sadd.s32 1, %s892_s17   ;;  %s1013_s15 = smov %s888_s16 }
 0x11e   : > { %p12_p5 = scmp.ge.s32.totalorder %s15_s17, 4   ;;  %s1014_s16 = smov %s1016_s18 }
 0x120   :  { %14 = sbr.rel (!%p12_p5) target bundleno = 2 (0x2), region = 95 }

</bundles_post_ra>
